<compile_context>
chip_gen: v7x
topology: tpu7x:2x2x1
jax: 0.10.0
libtpu: 0.0.40
codegen_flags: <defaults>
</compile_context>

<pallas_src>
import jax
import jax.numpy as jnp
from jax.experimental import pallas as pl
from jax.experimental.pallas import tpu as pltpu


_STEP_BYTES_BUDGET = 6 << 20   # per-step block bytes (~x2 when double-buffered)
_LANE_TILE_TARGET = 8192       # lane columns per step (amortises step overhead)
_MAX_BATCH_BLOCK = 16          # cap on unrolled per-step batch rows


# ---------------------------------------------------------------------------
# Kernels
# ---------------------------------------------------------------------------

def _matmul_bias_kernel(x_ref, w_ref, b_ref, o_ref):
    """Flat path: x (Cin, T), w (Cout, Cin), b (Cout, 1) -> o (Cout, T)."""
    acc = jnp.dot(w_ref[...], x_ref[...], preferred_element_type=jnp.float32)
    o_ref[...] = (acc + b_ref[...]).astype(o_ref.dtype)


def _batched_matmul_bias_kernel(x_ref, w_ref, b_ref, o_ref):
    """Native path: x (NB, Cin, TL), w (Cout, Cin), b (Cout, 1) -> o (NB, Cout, TL)."""
    w = w_ref[...]
    bias = b_ref[...]
    for i in range(x_ref.shape[0]):        # NB is small & static -> unrolled
        acc = jnp.dot(w, x_ref[i], preferred_element_type=jnp.float32)
        o_ref[i] = (acc + bias).astype(o_ref.dtype)


# ---------------------------------------------------------------------------
# Tiling heuristics
# ---------------------------------------------------------------------------

def _pick_lane_tile(n, cin, cout, *, ensure_two_blocks):
    """Tile for the lane-mapped axis of length n.

    Full axis when small; otherwise a multiple of 128 near _LANE_TILE_TARGET,
    capped by the per-step VMEM budget, avoiding a thin (<128 lane) final tile
    and (optionally) keeping >=2 blocks so a parallel grid axis spans both
    TensorCores on megacore parts.
    """
    max_cols = max(128, _STEP_BYTES_BUDGET // ((cin + cout) * 4))
    cap = min(_LANE_TILE_TARGET, max_cols)
    if n <= cap:
        if not (ensure_two_blocks and n >= 256):
            return n                       # block == full axis -> always legal
        cap = n // 2                       # split into >=2 blocks (megacore)
    cap = max(128, (cap // 128) * 128)
    chosen = cap
    for cand in range(cap, 127, -128):
        rem = n % cand
        if rem == 0 or rem >= 128:         # avoid a thin masked tail tile
            chosen = cand
            break
    return chosen


def _pick_batch_block(batch, cin, cout, tile_l, n_seq_blocks):
    """Batch rows per grid step: make each step's DMA a few MiB, cap by the
    VMEM budget and unroll length, and keep >=2 total grid blocks when
    possible so both TensorCores participate."""
    per_row = (cin + cout) * tile_l * 4
    nb = max(1, min(batch, _MAX_BATCH_BLOCK,
                    _STEP_BYTES_BUDGET // max(per_row, 1)))
    if n_seq_blocks == 1 and nb >= batch and batch >= 2:
        nb = (batch + 1) // 2              # 2 batch blocks -> both TensorCores
    return int(nb)


def _validate_lane_tile(tile, full, name):
    if tile > full:
        raise ValueError(f"{name}={tile} exceeds the axis length {full}")
    if tile != full and tile % 128 != 0:
        raise ValueError(
            f"{name}={tile} must equal the full axis ({full}) or be a multiple"
            " of 128 (lane width); anything else forces masked (slow) stores")


def _cost(batch, cin, length, cout):
    return pl.CostEstimate(
        flops=2 * batch * length * cin * cout,
        transcendentals=0,
        bytes_accessed=4 * (batch * cin * length + batch * cout * length
                            + cout * cin + cout),
    )


# ---------------------------------------------------------------------------
# Forward paths
# ---------------------------------------------------------------------------

def _forward_native(x, w2, b2, tile_l, block_b):
    """L >= 128: native NCL layout, grid over (batch blocks, sequence tiles)."""
    B, Cin, L = x.shape
    Cout = w2.shape[0]

    TL = tile_l if tile_l is not None else _pick_lane_tile(
        L, Cin, Cout, ensure_two_blocks=(B == 1))
    _validate_lane_tile(TL, L, "tile_l")
    n_seq = pl.cdiv(L, TL)

    NB = block_b if block_b is not None else _pick_batch_block(
        B, Cin, Cout, TL, n_seq)
    NB = int(max(1, min(NB, B)))
    grid = (pl.cdiv(B, NB), n_seq)

    return pl.pallas_call(
        _batched_matmul_bias_kernel,
        out_shape=jax.ShapeDtypeStruct((B, Cout, L), x.dtype),
        grid=grid,
        in_specs=[
            pl.BlockSpec((NB, Cin, TL), lambda b, l: (b, 0, l)),
            pl.BlockSpec((Cout, Cin), lambda b, l: (0, 0)),   # VMEM-resident
            pl.BlockSpec((Cout, 1), lambda b, l: (0, 0)),     # VMEM-resident
        ],
        out_specs=pl.BlockSpec((NB, Cout, TL), lambda b, l: (b, 0, l)),
        compiler_params=pltpu.CompilerParams(
            dimension_semantics=("parallel", "parallel")),
        cost_estimate=_cost(B, Cin, L, Cout),
    )(x, w2, b2)


def _forward_flat(x, w2, b2, tile_l):
    """L < 128: flatten (batch, position) onto the lane axis -> lane-dense stores."""
    B, Cin, L = x.shape
    Cout = w2.shape[0]
    N = B * L

    # Layout plumbing: (B, Cin, L) -> (Cin, B*L).  Input is tiny (Cin = 2..4).
    x_flat = jnp.transpose(x, (1, 0, 2)).reshape(Cin, N)

    TN = tile_l if tile_l is not None else _pick_lane_tile(
        N, Cin, Cout, ensure_two_blocks=True)
    _validate_lane_tile(TN, N, "tile_l")
    grid = (pl.cdiv(N, TN),)

    out_flat = pl.pallas_call(
        _matmul_bias_kernel,
        out_shape=jax.ShapeDtypeStruct((Cout, N), x.dtype),
        grid=grid,
        in_specs=[
            pl.BlockSpec((Cin, TN), lambda n: (0, n)),
            pl.BlockSpec((Cout, Cin), lambda n: (0, 0)),      # VMEM-resident
            pl.BlockSpec((Cout, 1), lambda n: (0, 0)),        # VMEM-resident
        ],
        out_specs=pl.BlockSpec((Cout, TN), lambda n: (0, n)),
        compiler_params=pltpu.CompilerParams(
            dimension_semantics=("parallel",)),
        cost_estimate=_cost(B, Cin, L, Cout),
    )(x_flat, w2, b2)

    # (Cout, B*L) -> (B, Cout, L)
    return jnp.transpose(out_flat.reshape(Cout, B, L), (1, 0, 2))


def encoder_forward(x, weight, bias, *, tile_l=None, block_b=None):
    """Equivalent to nn.Conv1d(Cin, Cout, kernel_size=1)(x).

    Args:
      x:       (B, Cin, L)    float32  (NCL, PyTorch layout)
      weight:  (Cout, Cin, 1) float32  (PyTorch Conv1d weight)
      bias:    (Cout,)        float32
      tile_l:  optional lane-axis tile override (applies to L on the native
               path, to B*L on the flat path); must equal the full axis or be
               a multiple of 128.
      block_b: optional batch rows per grid step (native path only).
    Returns:
      (B, Cout, L) float32
    """
    B, Cin, L = x.shape
    Cout = weight.shape[0]
    w2 = weight.reshape(Cout, Cin)        # (Cout, Cin)
    b2 = bias.reshape(Cout, 1)            # (Cout, 1) -> broadcasts along lanes

    if L >= 128:
        return _forward_native(x, w2, b2, tile_l, block_b)
    return _forward_flat(x, w2, b2, tile_l)


def init_encoder_params(key, input_size, hidden_size):
    """Deterministic synthetic init mimicking PyTorch Conv1d default (uniform +-1/sqrt(fan_in))."""
    k_w, k_b = jax.random.split(key)
    bound = 1.0 / jnp.sqrt(float(input_size * 1))
    weight = jax.random.uniform(
        k_w, (hidden_size, input_size, 1), jnp.float32, -bound, bound)
    bias = jax.random.uniform(
        k_b, (hidden_size,), jnp.float32, -bound, bound)
    return weight, bias


if __name__ == "__main__":
    # Small shapes consistent with the module's forward: (batch, input_size, seq_len)
    batch, input_size, seq_len, hidden_size = 2, 4, 16, 32

    key = jax.random.PRNGKey(0)
    k_x, k_p = jax.random.split(key)
    x = jax.random.normal(k_x, (batch, input_size, seq_len), jnp.float32)
    weight, bias = init_encoder_params(k_p, input_size, hidden_size)

    w2 = weight.reshape(hidden_size, input_size)

    # Flat (lane-dense) path: L < 128.
    out = jax.block_until_ready(encoder_forward(x, weight, bias))
    ref = jnp.einsum("oi,bil->bol", w2, x) + bias[None, :, None]
    assert out.shape == (batch, hidden_size, seq_len), out.shape
    assert jnp.allclose(out, ref, atol=1e-5, rtol=1e-5), "mismatch (flat path)"

    # Native NCL path: L >= 128 (exercised at small cost for coverage).
    x2 = jax.random.normal(k_x, (batch, input_size, 256), jnp.float32)
    out2 = jax.block_until_ready(encoder_forward(x2, weight, bias))
    ref2 = jnp.einsum("oi,bil->bol", w2, x2) + bias[None, :, None]
    assert out2.shape == (batch, hidden_size, 256), out2.shape
    assert jnp.allclose(out2, ref2, atol=1e-5, rtol=1e-5), "mismatch (native path)"

    print("KERNEL_OK")
</pallas_src>

<mosaic_0001>
module attributes {stable_mosaic.version = 11 : i64} {
  func.func @_matmul_bias_kernel(%arg0: i32, %arg1: memref<4x32xf32, #tpu.memory_space<vmem>>, %arg2: memref<32x4xf32, #tpu.memory_space<vmem>>, %arg3: memref<32x1xf32, #tpu.memory_space<vmem>>, %arg4: memref<32x32xf32, #tpu.memory_space<vmem>>) attributes {dimension_semantics = [#tpu.dimension_semantics<parallel>], iteration_bounds = array<i64: 1>, scalar_prefetch = 0 : i64, scratch_operands = 0 : i64, tpu.core_type = #tpu.core_type<tc>, window_params = [{transform_indices = @transform_0, window_bounds = array<i64: 4, 32>}, {pipeline_mode = #tpu.pipeline_mode<synchronous>, transform_indices = @transform_1, window_bounds = array<i64: 32, 4>}, {pipeline_mode = #tpu.pipeline_mode<synchronous>, transform_indices = @transform_2, window_bounds = array<i64: 32, 1>}, {transform_indices = @transform_3, window_bounds = array<i64: 32, 32>}]} {
    %c0 = arith.constant 0 : index
    %c0_0 = arith.constant 0 : index
    %0 = vector.load %arg2[%c0, %c0_0] : memref<32x4xf32, #tpu.memory_space<vmem>>, vector<32x4xf32>
    %c0_1 = arith.constant 0 : index
    %c0_2 = arith.constant 0 : index
    %1 = vector.load %arg1[%c0_1, %c0_2] : memref<4x32xf32, #tpu.memory_space<vmem>>, vector<4x32xf32>
    %cst = arith.constant dense<0.000000e+00> : vector<32x32xf32>
    %2 = tpu.matmul %0, %1, %cst {dimension_numbers = #tpu.dot_dimension_numbers<[1], [0], [0], [1], [0, 0, 1, 1], [], []>} : vector<32x4xf32>, vector<4x32xf32>, vector<32x32xf32> -> vector<32x32xf32>
    %c0_3 = arith.constant 0 : index
    %c0_4 = arith.constant 0 : index
    %3 = vector.load %arg3[%c0_3, %c0_4] : memref<32x1xf32, #tpu.memory_space<vmem>>, vector<32x1xf32>
    %4 = vector.broadcast %3 : vector<32x1xf32> to vector<32x32xf32>
    %5 = arith.addf %2, %4 : vector<32x32xf32>
    %c0_5 = arith.constant 0 : index
    %c0_6 = arith.constant 0 : index
    %6 = vector.load %arg4[%c0_5, %c0_6] : memref<32x32xf32, #tpu.memory_space<vmem>>, vector<32x32xf32>
    tpu.vector_store %arg4[%c0_5, %c0_6], %5 {strides = array<i32>} : memref<32x32xf32, #tpu.memory_space<vmem>>, vector<32x32xf32>,
    return
  }
  func.func @transform_0(%arg0: i32) -> (i32, i32) {
    %c0_i32 = arith.constant 0 : i32
    %c0_i32_0 = arith.constant 0 : i32
    return %c0_i32, %arg0 : i32, i32
  }
  func.func @transform_1(%arg0: i32) -> (i32, i32) {
    %c0_i32 = arith.constant 0 : i32
    %c0_i32_0 = arith.constant 0 : i32
    %c0_i32_1 = arith.constant 0 : i32
    return %c0_i32, %c0_i32_0 : i32, i32
  }
  func.func @transform_2(%arg0: i32) -> (i32, i32) {
    %c0_i32 = arith.constant 0 : i32
    %c0_i32_0 = arith.constant 0 : i32
    %c0_i32_1 = arith.constant 0 : i32
    return %c0_i32, %c0_i32_0 : i32, i32
  }
  func.func @transform_3(%arg0: i32) -> (i32, i32) {
    %c0_i32 = arith.constant 0 : i32
    %c0_i32_0 = arith.constant 0 : i32
    return %c0_i32, %arg0 : i32, i32
  }
}

</mosaic_0001>

<bundles_post_ra>
// kernel: tpu_custom_call.1
= control target key start
LH: loop header
LB: loop body
LE: loop exit
PB: predicated region body
PF: predicated region fallthrough
CT: control target
= control target key end

     0   :  { %vm57_vm0 = vcmask 1043456   ;;  %vm44_vm1 = vcmask 31744   ;;  %s280_s0 = inlined_call_operand.vmem [shape: f32[4,32], index: 0, kind: input, shape index: {}]   ;;  %s281_s1 = inlined_call_operand.vmem [shape: f32[32,4], index: 1, kind: input, shape index: {}]   ;;  %s282_s2 = inlined_call_operand.vmem [shape: f32[32,1], index: 2, kind: input, shape index: {}]   ;;  %s283_s3 = inlined_call_operand.hbm [shape: f32[32,32], index: 3, kind: output, shape index: {}]  }
   0x1   :  { %v19_v0 = vld [vmem:[%s280_s0] sm:$0xf]  ;;  %v17_v2 = vld [vmem:[%s281_s1 + $0x10] sm:$0xff]  ;;  %v16_v3 = vld [vmem:[%s281_s1 + $0x8] sm:$0xff] }
   0x2   :  { %v15_v1 = vld [vmem:[%s281_s1] sm:$0xff]  ;;  %177 = vmatprep.subr.msk.mxu0 %vm57_vm0, %v19_v0  ;;  %185 = vmatprep.subr.msk.mxu1 %vm57_vm0, %v19_v0  ;;  %v18_v4 = vld [vmem:[%s281_s1 + $0x18] sm:$0xff]  ;;  %v22_v5 = vld [vmem:[%s282_s2 + $0x10] sm:$0xff] }
   0x3   :  { %178 = vmatpush3.msk.msra.mxu0 %vm57_vm0, %v19_v0  ;;  %186 = vmatpush3.msk.msra.mxu1 %vm57_vm0, %v19_v0  ;;  %v20_v6 = vld [vmem:[%s282_s2] sm:$0xff] }
   0x4   :  { %179 = vmatprep.mubr.msk.f32.mxu0 %vm44_vm1, %v15_v1  ;;  %182 = vmatprep.mubr.msk.f32.mxu1 %vm44_vm1, %v17_v2 }
   0x5   :  { %8 = vsyncpa [#allocation3], 0  ;;  %180 = vmatmul.mubr.msk.f32.vlgmr.msra.gmra.mrb[0].mxu0 %vm44_vm1, %v16_v3  ;;  %183 = vmatmul.mubr.msk.f32.vlgmr.msra.gmra.mrb[0].mxu1 %vm44_vm1, %v18_v4  ;;  %v217_v7 = vmov 0   ;;  %v23_v8 = vld [vmem:[%s282_s2 + $0x18] sm:$0xff]  ;;  %v21_v9 = vld [vmem:[%s282_s2 + $0x8] sm:$0xff]  ;;  %s218_s28 = smov [#allocation2]  }
   0x6   :  { %192 = vset.pattern.permute.xlu1 %v217_v7  ;;  %191 = vset.pattern.permute.xlu0 %v217_v7  ;;  %s156_s29 = sshll.u32 %s218_s28, 4  ;;  %vm146_vm2 = vcmask 261120   ;;  %s157_s29 = int_to_ptr.vmem [resolvable:$true] %s156_s29 }
   0x7   :  { %36 = vperm.xlu1 %192, %v22_v5   ;;  %26 = vperm.xlu0 %191, %v20_v6   ;;  %s193_s2 = scalar_lea.vmem %s157_s29, 512  ;;  %p198_p1 = scmp.lt.s32.totalorder %s157_s29, %s157_s29 }
   0x8   :  { %p194_p0 = scmp.ne.s32.totalorder %s157_s29, %s193_s2  ;;  %p199_p2 = scmp.lt.s32.totalorder %s193_s2, %s193_s2 }
   0xa   :  { %p200_p3 = por %p199_p2, %p198_p1 }
   0xb   :  { %41 = vperm.xlu1 %192, %v23_v8   ;;  %31 = vperm.xlu0 %191, %v21_v9  }
   0xc   :  { %p201_p4 = pnand %p200_p3, %p194_p0 }
  0x86   :  { %v37_v10 = vpop.permute.xlu1 %36  ;;  %v27_v11 = vpop.permute.xlu0 %26 }
  0x8a   :  { %v42_v12 = vpop.permute.xlu1 %41  ;;  %v32_v13 = vpop.permute.xlu0 %31 }
  0xd8   :  { %v181_v14 = vpop.f32.mrb[0].mxu0  ;;  %v184_v15 = vpop.f32.mrb[0].mxu1 }
  0xd9   :  { %v133_v16 = vadd.f32 %v181_v14, %v32_v13  ;;  %v143_v17 = vadd.f32 %v184_v15, %v42_v12  ;;  %v127_v18 = vpop.f32.mrb[1].mxu0  ;;  %v137_v19 = vpop.f32.mrb[1].mxu1 }
  0xda   :  { %v128_v20 = vadd.f32 %v127_v18, %v27_v11  ;;  %v138_v21 = vadd.f32 %v137_v19, %v37_v10 }
  0xdb   :  { %148 = vst.msk [vmem:[#allocation2 + $0x8] sm:$0xff] %vm146_vm2, %v133_v16  ;;  %150 = vst.msk [vmem:[#allocation2 + $0x18] sm:$0xff] %vm146_vm2, %v143_v17 }
  0xdc   :  { %147 = vst.msk [vmem:[#allocation2] sm:$0xff] %vm146_vm2, %v128_v20  ;;  %149 = vst.msk [vmem:[#allocation2 + $0x10] sm:$0xff] %vm146_vm2, %v138_v21 }
  0xdd   :  { %204 = shalt.err (!%p201_p4)
}
  0xde   :  { %s205_s5 = scalar_lea.hbm %s283_s3, 512 }
  0xdf   :  { %p206_p5 = scmp.ne.s32.totalorder %s283_s3, %s205_s5  ;;  %p209_p6 = scmp.lt.u32.totalorder %s205_s5, %s283_s3 }
  0xe1   :  { %p211_p7 = pnand %p209_p6, %p206_p5 }
  0xe3   :  { %214 = shalt.err (!%p211_p7)
}
  0xe4   :  { %s219_s10 = smov 128   ;;  %s220_s11 = smov 8  }
  0xe5   :  { %162 = dma.vmem_to_hbm [thread:$0]  %s157_s29, 512, %s283_s3, [#allocation3], %s219_s10, %s219_s10, %s220_s11  }
  0xe6   :  { %215 = dma.done.wait [#allocation3], 512  }
  0xe7   :  { %216 = vsyncadd [#allocation3], 4294966784 }
  0xe8   :  { %166 = vsyncpa [#allocation3], 1 }

</bundles_post_ra>
